<compile_context>
chip_gen: v7x
topology: tpu7x:2x2x1
jax: 0.10.0
libtpu: 0.0.40
codegen_flags: <defaults>
</compile_context>

<pallas_src>
import jax
import jax.numpy as jnp
from jax.experimental import pallas as pl
from jax.experimental.pallas import tpu as pltpu


def _round_up(n, m):
    return ((n + m - 1) // m) * m


def _build_tcn_kernel(layer_meta, K, L, GL, M, c_in0_pad, c_last, n_weight_refs):
    """Kernel for the whole TCN stack; layer_meta is static per-layer info."""
    n_layers = len(layer_meta)

    def kernel(*refs):
        x_ref = refs[0]
        w_refs = refs[1:1 + n_weight_refs]
        o_ref = refs[1 + n_weight_refs]
        col_ref = refs[2 + n_weight_refs]   # (K*c_pad_max, GL) bf16 im2col
        buf_a = refs[3 + n_weight_refs]     # (c_pad_max, M+GL) bf16 block in/out
        buf_b = refs[4 + n_weight_refs]     # (c_pad_max, M+GL) bf16 intra-block h1

        # Zero the causal left margin (hygiene only: the per-sequence mask
        # below already discards anything read from it) and stage the input.
        zeros_m = jnp.zeros((buf_a.shape[0], M), jnp.bfloat16)
        buf_a[:, 0:M] = zeros_m
        buf_b[:, 0:M] = zeros_m
        buf_a[0:c_in0_pad, M:M + GL] = x_ref[...]

        def conv_relu(src, c_pad, w_ref, b_ref, d):
            # im2col: tap j holds the activation shifted right by s=(K-1-j)*d
            # with causal zero fill.  Each tap is ONE full-width, tile-aligned
            # store (c_pad is a multiple of 16); the shift comes from an
            # offset load at lane M-s out of the margined buffer, and the
            # mask zeroes the first s positions of every length-L sequence in
            # the packed lane slab (causal zeros + no cross-sequence leak).
            pos = jax.lax.broadcasted_iota(jnp.int32, (c_pad, GL), 1) % L
            for j in range(K):
                s = (K - 1 - j) * d
                r0 = j * c_pad
                if s == 0:
                    col_ref[r0:r0 + c_pad, :] = src[0:c_pad, M:M + GL]
                elif s >= L:
                    col_ref[r0:r0 + c_pad, :] = jnp.zeros((c_pad, GL), jnp.bfloat16)
                else:
                    tap = src[0:c_pad, M - s:M - s + GL]
                    col_ref[r0:r0 + c_pad, :] = jnp.where(
                        pos < s, jnp.zeros_like(tap), tap)
            acc = jnp.dot(w_ref[...], col_ref[0:K * c_pad, :],   # one MXU matmul
                          preferred_element_type=jnp.float32)    # f32 accumulate
            return jnp.maximum(acc + b_ref[...], 0.0)            # bias + ReLU (f32)

        widx = 0
        for li, (c_in_pad, c_out_pad, d, has_ds) in enumerate(layer_meta):
            w1f, b1, w2f, b2 = w_refs[widx:widx + 4]
            widx += 4
            if has_ds:
                wdf, bd = w_refs[widx], w_refs[widx + 1]
                widx += 2

            h1 = conv_relu(buf_a, c_in_pad, w1f, b1, d)
            # TODO(synk): dropout1/dropout2 are identity (eval mode); no RNG.
            buf_b[0:c_out_pad, M:M + GL] = h1.astype(jnp.bfloat16)
            h2 = conv_relu(buf_b, c_out_pad, w2f, b2, d)

            h_in = buf_a[0:c_in_pad, M:M + GL]                   # bf16
            if has_ds:                                           # 1x1 conv residual
                res = jnp.dot(wdf[...], h_in,
                              preferred_element_type=jnp.float32) + bd[...]
            else:
                res = h_in.astype(jnp.float32)
            h_out = jnp.maximum(h2 + res, 0.0)                   # residual + ReLU

            if li == n_layers - 1:
                o_ref[...] = h_out[0:c_last, :]
            else:
                buf_a[0:c_out_pad, M:M + GL] = h_out.astype(jnp.bfloat16)

    return kernel


def temporal_conv_net(x, params, kernel_size=2):
    """Forward pass of TemporalConvNet (eval mode).  x: (N, C_in, L) float32."""
    N, c_in0, L = x.shape
    K = kernel_size

    CPAD = 16                                    # bf16 sublane packing
    c_in0_pad = _round_up(c_in0, CPAD)

    # Batch packed along lanes: G sequences per grid step -> lane-dense slabs.
    def _pick_group(n, l):
        if l % 128 == 0:                         # keep blocks (8,128)-legal
            for g in range(1, n + 1):
                if n % g == 0 and g * l >= 512:
                    return g
        return n                                 # one lane slab per call
    G = _pick_group(N, L)
    GL = G * L

    def flat_conv(w, cop, cip):
        # (K, C_out, C_in) -> (C_out_pad, K*C_in_pad); zero-padded channels so
        # every im2col tap block is sublane-tile aligned; bf16 for the MXU.
        kk, co, ci = w.shape
        wp = jnp.zeros((kk, cop, cip), jnp.float32).at[:, :co, :ci].set(w)
        return jnp.transpose(wp, (1, 0, 2)).reshape(cop, kk * cip).astype(jnp.bfloat16)

    def pad_bias(b, cop):
        return jnp.zeros((cop, 1), jnp.float32).at[:b.shape[0], :].set(b)

    layer_meta = []
    flat_w = []
    w_specs = []
    c_prev, c_prev_pad, c_pad_max = c_in0, c_in0_pad, c_in0_pad
    max_shift = 0

    for i, blk in enumerate(params):
        d = 2 ** i
        Kw, c_out, c_in = blk["w1"].shape
        assert Kw == K and c_in == c_prev
        c_in_pad = c_prev_pad
        c_out_pad = _round_up(c_out, CPAD)
        has_ds = "wd" in blk
        layer_meta.append((c_in_pad, c_out_pad, d, has_ds))
        c_pad_max = max(c_pad_max, c_out_pad)
        max_shift = max(max_shift, (K - 1) * d)

        flat_w += [flat_conv(blk["w1"], c_out_pad, c_in_pad),
                   pad_bias(blk["b1"], c_out_pad),
                   flat_conv(blk["w2"], c_out_pad, c_out_pad),
                   pad_bias(blk["b2"], c_out_pad)]
        w_specs += [
            pl.BlockSpec((c_out_pad, K * c_in_pad), lambda g: (0, 0)),
            pl.BlockSpec((c_out_pad, 1), lambda g: (0, 0)),
            pl.BlockSpec((c_out_pad, K * c_out_pad), lambda g: (0, 0)),
            pl.BlockSpec((c_out_pad, 1), lambda g: (0, 0)),
        ]
        if has_ds:
            wdp = jnp.zeros((c_out_pad, c_in_pad),
                            jnp.float32).at[:c_out, :c_in].set(blk["wd"])
            flat_w += [wdp.astype(jnp.bfloat16), pad_bias(blk["bd"], c_out_pad)]
            w_specs += [pl.BlockSpec((c_out_pad, c_in_pad), lambda g: (0, 0)),
                        pl.BlockSpec((c_out_pad, 1), lambda g: (0, 0))]
        c_prev, c_prev_pad = c_out, c_out_pad

    c_last = c_prev
    M = _round_up(max(max_shift, 1), 128)        # lane-aligned causal margin

    # Input layout plumbing: (N, C, L) -> channel-major bf16 slab (C_pad, N*L).
    x_cf = jnp.transpose(x, (1, 0, 2)).reshape(c_in0, N * L).astype(jnp.bfloat16)
    x_slab = jnp.zeros((c_in0_pad, N * L), jnp.bfloat16).at[:c_in0, :].set(x_cf)

    n_weight_refs = len(flat_w)
    kernel = _build_tcn_kernel(tuple(layer_meta), K, L, GL, M,
                               c_in0_pad, c_last, n_weight_refs)

    # Explicit VMEM budget (default scoped limit is only 16/32 MiB).
    w_bytes = sum(int(a.size) * a.dtype.itemsize for a in flat_w)
    blk_bytes = 2 * (c_in0_pad * GL * 2 + c_last * GL * 4)       # dbl-buffered I/O
    scratch_bytes = (K * c_pad_max * GL + 2 * c_pad_max * (M + GL)) * 2
    vmem_limit = min(64 << 20, max(32 << 20,
                                   int(1.5 * (w_bytes + blk_bytes + scratch_bytes))))

    # TODO(synk): for long sequences, add a time-tiling grid axis (lane tile a
    # multiple of 128) with a left halo of the stack receptive field
    # 2*(K-1)*(2**len(params)-1), so the resident slab fits v7x's 64 MiB VMEM
    # and both TensorCores get parallel steps even at batch 1.
    grid_spec = pltpu.PrefetchScalarGridSpec(
        num_scalar_prefetch=0,
        grid=(N // G,),
        in_specs=[pl.BlockSpec((c_in0_pad, GL), lambda g: (0, g))] + w_specs,
        out_specs=pl.BlockSpec((c_last, GL), lambda g: (0, g)),
        scratch_shapes=[
            pltpu.VMEM((K * c_pad_max, GL), jnp.bfloat16),        # im2col
            pltpu.VMEM((c_pad_max, M + GL), jnp.bfloat16),        # block in/out
            pltpu.VMEM((c_pad_max, M + GL), jnp.bfloat16),        # intra-block h1
        ],
    )
    out = pl.pallas_call(
        kernel,
        out_shape=jax.ShapeDtypeStruct((c_last, N * L), jnp.float32),
        grid_spec=grid_spec,
        compiler_params=pltpu.CompilerParams(
            dimension_semantics=("parallel",),
            vmem_limit_bytes=vmem_limit),
    )(x_slab, *flat_w)

    # Layout plumbing back to the PyTorch NCL layout.
    return jnp.transpose(out.reshape(c_last, N, L), (1, 0, 2))


# ----------------------------------------------------------------------------
# Parameter init (matches PyTorch Conv1d uniform(-1/sqrt(fan_in)) style init).
# Weights are stored as (K, C_out, C_in): index j == torch weight[:, :, j].
# ----------------------------------------------------------------------------
def _conv1d_params(key, c_out, c_in, k):
    k1, k2 = jax.random.split(key)
    bound = (c_in * k) ** -0.5
    w = jax.random.uniform(k1, (k, c_out, c_in), jnp.float32, -bound, bound)
    b = jax.random.uniform(k2, (c_out, 1), jnp.float32, -bound, bound)
    return w, b


def init_tcn_params(key, num_inputs, num_channels, kernel_size=2):
    params = []
    for i, c_out in enumerate(num_channels):
        c_in = num_inputs if i == 0 else num_channels[i - 1]
        key, k1, k2, k3 = jax.random.split(key, 4)
        w1, b1 = _conv1d_params(k1, c_out, c_in, kernel_size)
        w2, b2 = _conv1d_params(k2, c_out, c_out, kernel_size)
        blk = {"w1": w1, "b1": b1, "w2": w2, "b2": b2}
        if c_in != c_out:  # 1x1 downsample conv on residual path
            wd, bd = _conv1d_params(k3, c_out, c_in, 1)
            blk["wd"] = wd.reshape(c_out, c_in)
            blk["bd"] = bd
        params.append(blk)
    return params


# ----------------------------------------------------------------------------
# Pure-JAX reference (lax.conv), mirroring the kernel's bf16-matmul /
# bf16-staging policy so the tolerance stays tight; validates the causal
# pad/chomp algebra, the padded im2col flattening and the residual path.
# ----------------------------------------------------------------------------
def _tcn_reference(x, params, kernel_size):
    K = kernel_size

    def conv(h_bf, w, b, d, p):
        wt = jnp.transpose(w, (1, 2, 0)).astype(jnp.bfloat16)    # torch (Co,Ci,K)
        y = jax.lax.conv_general_dilated(
            h_bf, wt, window_strides=(1,), padding=[(p, p)],
            rhs_dilation=(d,), dimension_numbers=("NCH", "OIH", "NCH"),
            preferred_element_type=jnp.float32)
        return y[:, :, :h_bf.shape[2]] + b[None, :, :]           # chomp + bias

    h_bf = x.astype(jnp.bfloat16)      # kernel casts x to bf16 at the boundary
    out = None
    for i, blk in enumerate(params):
        d = 2 ** i
        p = (K - 1) * d
        h1 = jax.nn.relu(conv(h_bf, blk["w1"], blk["b1"], d, p)).astype(jnp.bfloat16)
        h2 = jax.nn.relu(conv(h1, blk["w2"], blk["b2"], d, p))
        if "wd" in blk:
            res = jnp.einsum("oc,ncl->nol", blk["wd"].astype(jnp.bfloat16), h_bf,
                             preferred_element_type=jnp.float32) + blk["bd"][None]
        else:
            res = h_bf.astype(jnp.float32)
        out = jax.nn.relu(h2 + res)
        h_bf = out.astype(jnp.bfloat16)  # kernel stages inter-layer acts in bf16
    return out


if __name__ == "__main__":
    key = jax.random.PRNGKey(0)
    kx, kp = jax.random.split(key)

    N, C_IN, L = 2, 4, 16                 # batch, input channels, seq length
    NUM_CHANNELS = [8, 8]                 # two TemporalBlocks (dilations 1, 2)
    KSIZE = 2

    x = jax.random.normal(kx, (N, C_IN, L), jnp.float32)
    params = init_tcn_params(kp, C_IN, NUM_CHANNELS, kernel_size=KSIZE)

    y = temporal_conv_net(x, params, kernel_size=KSIZE)
    y = jax.block_until_ready(y)
    assert y.shape == (N, NUM_CHANNELS[-1], L), y.shape

    y_ref = _tcn_reference(x, params, KSIZE)
    assert jnp.allclose(y, y_ref, atol=5e-2, rtol=5e-2), \
        float(jnp.max(jnp.abs(y - y_ref)))

    print("KERNEL_OK")
</pallas_src>

<mosaic_0001>
module attributes {stable_mosaic.version = 11 : i64} {
  func.func @kernel(%arg0: i32, %arg1: memref<16x32xbf16, #tpu.memory_space<vmem>>, %arg2: memref<16x32xbf16, #tpu.memory_space<vmem>>, %arg3: memref<16x1xf32, #tpu.memory_space<vmem>>, %arg4: memref<16x32xbf16, #tpu.memory_space<vmem>>, %arg5: memref<16x1xf32, #tpu.memory_space<vmem>>, %arg6: memref<16x16xbf16, #tpu.memory_space<vmem>>, %arg7: memref<16x1xf32, #tpu.memory_space<vmem>>, %arg8: memref<16x32xbf16, #tpu.memory_space<vmem>>, %arg9: memref<16x1xf32, #tpu.memory_space<vmem>>, %arg10: memref<16x32xbf16, #tpu.memory_space<vmem>>, %arg11: memref<16x1xf32, #tpu.memory_space<vmem>>, %arg12: memref<8x32xf32, #tpu.memory_space<vmem>>, %arg13: memref<32x32xbf16, #tpu.memory_space<vmem>>, %arg14: memref<16x160xbf16, #tpu.memory_space<vmem>>, %arg15: memref<16x160xbf16, #tpu.memory_space<vmem>>) attributes {dimension_semantics = [#tpu.dimension_semantics<parallel>], iteration_bounds = array<i64: 1>, scalar_prefetch = 0 : i64, scratch_operands = 3 : i64, tpu.core_type = #tpu.core_type<tc>, window_params = [{transform_indices = @transform_0, window_bounds = array<i64: 16, 32>}, {pipeline_mode = #tpu.pipeline_mode<synchronous>, transform_indices = @transform_1, window_bounds = array<i64: 16, 32>}, {pipeline_mode = #tpu.pipeline_mode<synchronous>, transform_indices = @transform_2, window_bounds = array<i64: 16, 1>}, {pipeline_mode = #tpu.pipeline_mode<synchronous>, transform_indices = @transform_3, window_bounds = array<i64: 16, 32>}, {pipeline_mode = #tpu.pipeline_mode<synchronous>, transform_indices = @transform_4, window_bounds = array<i64: 16, 1>}, {pipeline_mode = #tpu.pipeline_mode<synchronous>, transform_indices = @transform_5, window_bounds = array<i64: 16, 16>}, {pipeline_mode = #tpu.pipeline_mode<synchronous>, transform_indices = @transform_6, window_bounds = array<i64: 16, 1>}, {pipeline_mode = #tpu.pipeline_mode<synchronous>, transform_indices = @transform_7, window_bounds = array<i64: 16, 32>}, {pipeline_mode = #tpu.pipeline_mode<synchronous>, transform_indices = @transform_8, window_bounds = array<i64: 16, 1>}, {pipeline_mode = #tpu.pipeline_mode<synchronous>, transform_indices = @transform_9, window_bounds = array<i64: 16, 32>}, {pipeline_mode = #tpu.pipeline_mode<synchronous>, transform_indices = @transform_10, window_bounds = array<i64: 16, 1>}, {transform_indices = @transform_11, window_bounds = array<i64: 8, 32>}]} {
    %cst = arith.constant 0.000000e+00 : bf16
    %0 = vector.broadcast %cst : bf16 to vector<16x128xbf16>
    %c0 = arith.constant 0 : index
    %c0_0 = arith.constant 0 : index
    %1 = vector.load %arg14[%c0, %c0_0] : memref<16x160xbf16, #tpu.memory_space<vmem>>, vector<16x128xbf16>
    tpu.vector_store %arg14[%c0, %c0_0], %0 {strides = array<i32>} : memref<16x160xbf16, #tpu.memory_space<vmem>>, vector<16x128xbf16>,
    %c0_1 = arith.constant 0 : index
    %c0_2 = arith.constant 0 : index
    %2 = vector.load %arg15[%c0_1, %c0_2] : memref<16x160xbf16, #tpu.memory_space<vmem>>, vector<16x128xbf16>
    tpu.vector_store %arg15[%c0_1, %c0_2], %0 {strides = array<i32>} : memref<16x160xbf16, #tpu.memory_space<vmem>>, vector<16x128xbf16>,
    %c0_3 = arith.constant 0 : index
    %c0_4 = arith.constant 0 : index
    %3 = vector.load %arg1[%c0_3, %c0_4] : memref<16x32xbf16, #tpu.memory_space<vmem>>, vector<16x32xbf16>
    %c0_5 = arith.constant 0 : index
    %c128 = arith.constant 128 : index
    %4 = vector.load %arg14[%c0_5, %c128] : memref<16x160xbf16, #tpu.memory_space<vmem>>, vector<16x32xbf16>
    tpu.vector_store %arg14[%c0_5, %c128], %3 {strides = array<i32>} : memref<16x160xbf16, #tpu.memory_space<vmem>>, vector<16x32xbf16>,
    %5 = tpu.iota {dimensions = array<i32: 1>} : vector<16x32xi32>
    %c16_i32 = arith.constant 16 : i32
    %c0_i32 = arith.constant 0 : i32
    %6 = arith.cmpi eq, %c16_i32, %c0_i32 : i32
    %c1_i32 = arith.constant 1 : i32
    %7 = arith.select %6, %c1_i32, %c16_i32 : i32
    %8 = vector.broadcast %7 : i32 to vector<16x32xi32>
    %9 = arith.remsi %5, %8 : vector<16x32xi32>
    %c0_i32_6 = arith.constant 0 : i32
    %10 = vector.broadcast %c0_i32_6 : i32 to vector<16x32xi32>
    %11 = arith.cmpi ne, %9, %10 : vector<16x32xi32>
    %c0_i32_7 = arith.constant 0 : i32
    %12 = vector.broadcast %c0_i32_7 : i32 to vector<16x32xi32>
    %13 = arith.cmpi slt, %9, %12 : vector<16x32xi32>
    %c0_i32_8 = arith.constant 0 : i32
    %14 = arith.cmpi slt, %7, %c0_i32_8 : i32
    %15 = vector.broadcast %14 : i1 to vector<16x32xi1>
    %16 = vector.broadcast %15 : vector<16x32xi1> to vector<16x32xi1>
    %17 = arith.xori %13, %16 : vector<16x32xi1>
    %18 = arith.andi %17, %11 : vector<16x32xi1>
    %19 = vector.broadcast %7 : i32 to vector<16x32xi32>
    %20 = arith.addi %9, %19 : vector<16x32xi32>
    %21 = arith.select %18, %20, %9 : vector<16x32xi1>, vector<16x32xi32>
    %c0_9 = arith.constant 0 : index
    %c127 = arith.constant 127 : index
    %22 = vector.load %arg14[%c0_9, %c127] : memref<16x160xbf16, #tpu.memory_space<vmem>>, vector<16x32xbf16>
    %c1_i32_10 = arith.constant 1 : i32
    %23 = vector.broadcast %c1_i32_10 : i32 to vector<16x32xi32>
    %24 = arith.cmpi slt, %21, %23 : vector<16x32xi32>
    %cst_11 = arith.constant 0.000000e+00 : bf16
    %25 = vector.broadcast %cst_11 : bf16 to vector<16x32xbf16>
    %26 = arith.select %24, %25, %22 : vector<16x32xi1>, vector<16x32xbf16>
    %c0_12 = arith.constant 0 : index
    %c0_13 = arith.constant 0 : index
    %27 = vector.load %arg13[%c0_12, %c0_13] : memref<32x32xbf16, #tpu.memory_space<vmem>>, vector<16x32xbf16>
    tpu.vector_store %arg13[%c0_12, %c0_13], %26 {strides = array<i32>} : memref<32x32xbf16, #tpu.memory_space<vmem>>, vector<16x32xbf16>,
    %c0_14 = arith.constant 0 : index
    %c128_15 = arith.constant 128 : index
    %28 = vector.load %arg14[%c0_14, %c128_15] : memref<16x160xbf16, #tpu.memory_space<vmem>>, vector<16x32xbf16>
    %c16 = arith.constant 16 : index
    %c0_16 = arith.constant 0 : index
    %29 = vector.load %arg13[%c16, %c0_16] : memref<32x32xbf16, #tpu.memory_space<vmem>>, vector<16x32xbf16>
    tpu.vector_store %arg13[%c16, %c0_16], %28 {strides = array<i32>} : memref<32x32xbf16, #tpu.memory_space<vmem>>, vector<16x32xbf16>,
    %c0_17 = arith.constant 0 : index
    %c0_18 = arith.constant 0 : index
    %30 = vector.load %arg2[%c0_17, %c0_18] : memref<16x32xbf16, #tpu.memory_space<vmem>>, vector<16x32xbf16>
    %c0_19 = arith.constant 0 : index
    %c0_20 = arith.constant 0 : index
    %31 = vector.load %arg13[%c0_19, %c0_20] : memref<32x32xbf16, #tpu.memory_space<vmem>>, vector<32x32xbf16>
    %cst_21 = arith.constant dense<0.000000e+00> : vector<16x32xf32>
    %32 = tpu.matmul %30, %31, %cst_21 {dimension_numbers = #tpu.dot_dimension_numbers<[1], [0], [0], [1], [0, 0, 1, 1], [], []>} : vector<16x32xbf16>, vector<32x32xbf16>, vector<16x32xf32> -> vector<16x32xf32>
    %c0_22 = arith.constant 0 : index
    %c0_23 = arith.constant 0 : index
    %33 = vector.load %arg3[%c0_22, %c0_23] : memref<16x1xf32, #tpu.memory_space<vmem>>, vector<16x1xf32>
    %34 = vector.broadcast %33 : vector<16x1xf32> to vector<16x32xf32>
    %35 = arith.addf %32, %34 : vector<16x32xf32>
    %cst_24 = arith.constant 0.000000e+00 : f32
    %36 = vector.broadcast %cst_24 : f32 to vector<16x32xf32>
    %37 = arith.maximumf %35, %36 : vector<16x32xf32>
    %38 = arith.truncf %37 : vector<16x32xf32> to vector<16x32xbf16>
    %c0_25 = arith.constant 0 : index
    %c128_26 = arith.constant 128 : index
    %39 = vector.load %arg15[%c0_25, %c128_26] : memref<16x160xbf16, #tpu.memory_space<vmem>>, vector<16x32xbf16>
    tpu.vector_store %arg15[%c0_25, %c128_26], %38 {strides = array<i32>} : memref<16x160xbf16, #tpu.memory_space<vmem>>, vector<16x32xbf16>,
    %40 = tpu.iota {dimensions = array<i32: 1>} : vector<16x32xi32>
    %c16_i32_27 = arith.constant 16 : i32
    %c0_i32_28 = arith.constant 0 : i32
    %41 = arith.cmpi eq, %c16_i32_27, %c0_i32_28 : i32
    %c1_i32_29 = arith.constant 1 : i32
    %42 = arith.select %41, %c1_i32_29, %c16_i32_27 : i32
    %43 = vector.broadcast %42 : i32 to vector<16x32xi32>
    %44 = arith.remsi %40, %43 : vector<16x32xi32>
    %c0_i32_30 = arith.constant 0 : i32
    %45 = vector.broadcast %c0_i32_30 : i32 to vector<16x32xi32>
    %46 = arith.cmpi ne, %44, %45 : vector<16x32xi32>
    %c0_i32_31 = arith.constant 0 : i32
    %47 = vector.broadcast %c0_i32_31 : i32 to vector<16x32xi32>
    %48 = arith.cmpi slt, %44, %47 : vector<16x32xi32>
    %c0_i32_32 = arith.constant 0 : i32
    %49 = arith.cmpi slt, %42, %c0_i32_32 : i32
    %50 = vector.broadcast %49 : i1 to vector<16x32xi1>
    %51 = vector.broadcast %50 : vector<16x32xi1> to vector<16x32xi1>
    %52 = arith.xori %48, %51 : vector<16x32xi1>
    %53 = arith.andi %52, %46 : vector<16x32xi1>
    %54 = vector.broadcast %42 : i32 to vector<16x32xi32>
    %55 = arith.addi %44, %54 : vector<16x32xi32>
    %56 = arith.select %53, %55, %44 : vector<16x32xi1>, vector<16x32xi32>
    %c0_33 = arith.constant 0 : index
    %c127_34 = arith.constant 127 : index
    %57 = vector.load %arg15[%c0_33, %c127_34] : memref<16x160xbf16, #tpu.memory_space<vmem>>, vector<16x32xbf16>
    %c1_i32_35 = arith.constant 1 : i32
    %58 = vector.broadcast %c1_i32_35 : i32 to vector<16x32xi32>
    %59 = arith.cmpi slt, %56, %58 : vector<16x32xi32>
    %cst_36 = arith.constant 0.000000e+00 : bf16
    %60 = vector.broadcast %cst_36 : bf16 to vector<16x32xbf16>
    %61 = arith.select %59, %60, %57 : vector<16x32xi1>, vector<16x32xbf16>
    %c0_37 = arith.constant 0 : index
    %c0_38 = arith.constant 0 : index
    %62 = vector.load %arg13[%c0_37, %c0_38] : memref<32x32xbf16, #tpu.memory_space<vmem>>, vector<16x32xbf16>
    tpu.vector_store %arg13[%c0_37, %c0_38], %61 {strides = array<i32>} : memref<32x32xbf16, #tpu.memory_space<vmem>>, vector<16x32xbf16>,
    %c0_39 = arith.constant 0 : index
    %c128_40 = arith.constant 128 : index
    %63 = vector.load %arg15[%c0_39, %c128_40] : memref<16x160xbf16, #tpu.memory_space<vmem>>, vector<16x32xbf16>
    %c16_41 = arith.constant 16 : index
    %c0_42 = arith.constant 0 : index
    %64 = vector.load %arg13[%c16_41, %c0_42] : memref<32x32xbf16, #tpu.memory_space<vmem>>, vector<16x32xbf16>
    tpu.vector_store %arg13[%c16_41, %c0_42], %63 {strides = array<i32>} : memref<32x32xbf16, #tpu.memory_space<vmem>>, vector<16x32xbf16>,
    %c0_43 = arith.constant 0 : index
    %c0_44 = arith.constant 0 : index
    %65 = vector.load %arg4[%c0_43, %c0_44] : memref<16x32xbf16, #tpu.memory_space<vmem>>, vector<16x32xbf16>
    %c0_45 = arith.constant 0 : index
    %c0_46 = arith.constant 0 : index
    %66 = vector.load %arg13[%c0_45, %c0_46] : memref<32x32xbf16, #tpu.memory_space<vmem>>, vector<32x32xbf16>
    %cst_47 = arith.constant dense<0.000000e+00> : vector<16x32xf32>
    %67 = tpu.matmul %65, %66, %cst_47 {dimension_numbers = #tpu.dot_dimension_numbers<[1], [0], [0], [1], [0, 0, 1, 1], [], []>} : vector<16x32xbf16>, vector<32x32xbf16>, vector<16x32xf32> -> vector<16x32xf32>
    %c0_48 = arith.constant 0 : index
    %c0_49 = arith.constant 0 : index
    %68 = vector.load %arg5[%c0_48, %c0_49] : memref<16x1xf32, #tpu.memory_space<vmem>>, vector<16x1xf32>
    %69 = vector.broadcast %68 : vector<16x1xf32> to vector<16x32xf32>
    %70 = arith.addf %67, %69 : vector<16x32xf32>
    %cst_50 = arith.constant 0.000000e+00 : f32
    %71 = vector.broadcast %cst_50 : f32 to vector<16x32xf32>
    %72 = arith.maximumf %70, %71 : vector<16x32xf32>
    %c0_51 = arith.constant 0 : index
    %c128_52 = arith.constant 128 : index
    %73 = vector.load %arg14[%c0_51, %c128_52] : memref<16x160xbf16, #tpu.memory_space<vmem>>, vector<16x32xbf16>
    %c0_53 = arith.constant 0 : index
    %c0_54 = arith.constant 0 : index
    %74 = vector.load %arg6[%c0_53, %c0_54] : memref<16x16xbf16, #tpu.memory_space<vmem>>, vector<16x16xbf16>
    %cst_55 = arith.constant dense<0.000000e+00> : vector<16x32xf32>
    %75 = tpu.matmul %74, %73, %cst_55 {dimension_numbers = #tpu.dot_dimension_numbers<[1], [0], [0], [1], [0, 0, 1, 1], [], []>} : vector<16x16xbf16>, vector<16x32xbf16>, vector<16x32xf32> -> vector<16x32xf32>
    %c0_56 = arith.constant 0 : index
    %c0_57 = arith.constant 0 : index
    %76 = vector.load %arg7[%c0_56, %c0_57] : memref<16x1xf32, #tpu.memory_space<vmem>>, vector<16x1xf32>
    %77 = vector.broadcast %76 : vector<16x1xf32> to vector<16x32xf32>
    %78 = arith.addf %75, %77 : vector<16x32xf32>
    %79 = arith.addf %72, %78 : vector<16x32xf32>
    %cst_58 = arith.constant 0.000000e+00 : f32
    %80 = vector.broadcast %cst_58 : f32 to vector<16x32xf32>
    %81 = arith.maximumf %79, %80 : vector<16x32xf32>
    %82 = arith.truncf %81 : vector<16x32xf32> to vector<16x32xbf16>
    %c0_59 = arith.constant 0 : index
    %c128_60 = arith.constant 128 : index
    %83 = vector.load %arg14[%c0_59, %c128_60] : memref<16x160xbf16, #tpu.memory_space<vmem>>, vector<16x32xbf16>
    tpu.vector_store %arg14[%c0_59, %c128_60], %82 {strides = array<i32>} : memref<16x160xbf16, #tpu.memory_space<vmem>>, vector<16x32xbf16>,
    %84 = tpu.iota {dimensions = array<i32: 1>} : vector<16x32xi32>
    %c16_i32_61 = arith.constant 16 : i32
    %c0_i32_62 = arith.constant 0 : i32
    %85 = arith.cmpi eq, %c16_i32_61, %c0_i32_62 : i32
    %c1_i32_63 = arith.constant 1 : i32
    %86 = arith.select %85, %c1_i32_63, %c16_i32_61 : i32
    %87 = vector.broadcast %86 : i32 to vector<16x32xi32>
    %88 = arith.remsi %84, %87 : vector<16x32xi32>
    %c0_i32_64 = arith.constant 0 : i32
    %89 = vector.broadcast %c0_i32_64 : i32 to vector<16x32xi32>
    %90 = arith.cmpi ne, %88, %89 : vector<16x32xi32>
    %c0_i32_65 = arith.constant 0 : i32
    %91 = vector.broadcast %c0_i32_65 : i32 to vector<16x32xi32>
    %92 = arith.cmpi slt, %88, %91 : vector<16x32xi32>
    %c0_i32_66 = arith.constant 0 : i32
    %93 = arith.cmpi slt, %86, %c0_i32_66 : i32
    %94 = vector.broadcast %93 : i1 to vector<16x32xi1>
    %95 = vector.broadcast %94 : vector<16x32xi1> to vector<16x32xi1>
    %96 = arith.xori %92, %95 : vector<16x32xi1>
    %97 = arith.andi %96, %90 : vector<16x32xi1>
    %98 = vector.broadcast %86 : i32 to vector<16x32xi32>
    %99 = arith.addi %88, %98 : vector<16x32xi32>
    %100 = arith.select %97, %99, %88 : vector<16x32xi1>, vector<16x32xi32>
    %c0_67 = arith.constant 0 : index
    %c126 = arith.constant 126 : index
    %101 = vector.load %arg14[%c0_67, %c126] : memref<16x160xbf16, #tpu.memory_space<vmem>>, vector<16x32xbf16>
    %c2_i32 = arith.constant 2 : i32
    %102 = vector.broadcast %c2_i32 : i32 to vector<16x32xi32>
    %103 = arith.cmpi slt, %100, %102 : vector<16x32xi32>
    %cst_68 = arith.constant 0.000000e+00 : bf16
    %104 = vector.broadcast %cst_68 : bf16 to vector<16x32xbf16>
    %105 = arith.select %103, %104, %101 : vector<16x32xi1>, vector<16x32xbf16>
    %c0_69 = arith.constant 0 : index
    %c0_70 = arith.constant 0 : index
    %106 = vector.load %arg13[%c0_69, %c0_70] : memref<32x32xbf16, #tpu.memory_space<vmem>>, vector<16x32xbf16>
    tpu.vector_store %arg13[%c0_69, %c0_70], %105 {strides = array<i32>} : memref<32x32xbf16, #tpu.memory_space<vmem>>, vector<16x32xbf16>,
    %c0_71 = arith.constant 0 : index
    %c128_72 = arith.constant 128 : index
    %107 = vector.load %arg14[%c0_71, %c128_72] : memref<16x160xbf16, #tpu.memory_space<vmem>>, vector<16x32xbf16>
    %c16_73 = arith.constant 16 : index
    %c0_74 = arith.constant 0 : index
    %108 = vector.load %arg13[%c16_73, %c0_74] : memref<32x32xbf16, #tpu.memory_space<vmem>>, vector<16x32xbf16>
    tpu.vector_store %arg13[%c16_73, %c0_74], %107 {strides = array<i32>} : memref<32x32xbf16, #tpu.memory_space<vmem>>, vector<16x32xbf16>,
    %c0_75 = arith.constant 0 : index
    %c0_76 = arith.constant 0 : index
    %109 = vector.load %arg8[%c0_75, %c0_76] : memref<16x32xbf16, #tpu.memory_space<vmem>>, vector<16x32xbf16>
    %c0_77 = arith.constant 0 : index
    %c0_78 = arith.constant 0 : index
    %110 = vector.load %arg13[%c0_77, %c0_78] : memref<32x32xbf16, #tpu.memory_space<vmem>>, vector<32x32xbf16>
    %cst_79 = arith.constant dense<0.000000e+00> : vector<16x32xf32>
    %111 = tpu.matmul %109, %110, %cst_79 {dimension_numbers = #tpu.dot_dimension_numbers<[1], [0], [0], [1], [0, 0, 1, 1], [], []>} : vector<16x32xbf16>, vector<32x32xbf16>, vector<16x32xf32> -> vector<16x32xf32>
    %c0_80 = arith.constant 0 : index
    %c0_81 = arith.constant 0 : index
    %112 = vector.load %arg9[%c0_80, %c0_81] : memref<16x1xf32, #tpu.memory_space<vmem>>, vector<16x1xf32>
    %113 = vector.broadcast %112 : vector<16x1xf32> to vector<16x32xf32>
    %114 = arith.addf %111, %113 : vector<16x32xf32>
    %cst_82 = arith.constant 0.000000e+00 : f32
    %115 = vector.broadcast %cst_82 : f32 to vector<16x32xf32>
    %116 = arith.maximumf %114, %115 : vector<16x32xf32>
    %117 = arith.truncf %116 : vector<16x32xf32> to vector<16x32xbf16>
    %c0_83 = arith.constant 0 : index
    %c128_84 = arith.constant 128 : index
    %118 = vector.load %arg15[%c0_83, %c128_84] : memref<16x160xbf16, #tpu.memory_space<vmem>>, vector<16x32xbf16>
    tpu.vector_store %arg15[%c0_83, %c128_84], %117 {strides = array<i32>} : memref<16x160xbf16, #tpu.memory_space<vmem>>, vector<16x32xbf16>,
    %119 = tpu.iota {dimensions = array<i32: 1>} : vector<16x32xi32>
    %c16_i32_85 = arith.constant 16 : i32
    %c0_i32_86 = arith.constant 0 : i32
    %120 = arith.cmpi eq, %c16_i32_85, %c0_i32_86 : i32
    %c1_i32_87 = arith.constant 1 : i32
    %121 = arith.select %120, %c1_i32_87, %c16_i32_85 : i32
    %122 = vector.broadcast %121 : i32 to vector<16x32xi32>
    %123 = arith.remsi %119, %122 : vector<16x32xi32>
    %c0_i32_88 = arith.constant 0 : i32
    %124 = vector.broadcast %c0_i32_88 : i32 to vector<16x32xi32>
    %125 = arith.cmpi ne, %123, %124 : vector<16x32xi32>
    %c0_i32_89 = arith.constant 0 : i32
    %126 = vector.broadcast %c0_i32_89 : i32 to vector<16x32xi32>
    %127 = arith.cmpi slt, %123, %126 : vector<16x32xi32>
    %c0_i32_90 = arith.constant 0 : i32
    %128 = arith.cmpi slt, %121, %c0_i32_90 : i32
    %129 = vector.broadcast %128 : i1 to vector<16x32xi1>
    %130 = vector.broadcast %129 : vector<16x32xi1> to vector<16x32xi1>
    %131 = arith.xori %127, %130 : vector<16x32xi1>
    %132 = arith.andi %131, %125 : vector<16x32xi1>
    %133 = vector.broadcast %121 : i32 to vector<16x32xi32>
    %134 = arith.addi %123, %133 : vector<16x32xi32>
    %135 = arith.select %132, %134, %123 : vector<16x32xi1>, vector<16x32xi32>
    %c0_91 = arith.constant 0 : index
    %c126_92 = arith.constant 126 : index
    %136 = vector.load %arg15[%c0_91, %c126_92] : memref<16x160xbf16, #tpu.memory_space<vmem>>, vector<16x32xbf16>
    %c2_i32_93 = arith.constant 2 : i32
    %137 = vector.broadcast %c2_i32_93 : i32 to vector<16x32xi32>
    %138 = arith.cmpi slt, %135, %137 : vector<16x32xi32>
    %cst_94 = arith.constant 0.000000e+00 : bf16
    %139 = vector.broadcast %cst_94 : bf16 to vector<16x32xbf16>
    %140 = arith.select %138, %139, %136 : vector<16x32xi1>, vector<16x32xbf16>
    %c0_95 = arith.constant 0 : index
    %c0_96 = arith.constant 0 : index
    %141 = vector.load %arg13[%c0_95, %c0_96] : memref<32x32xbf16, #tpu.memory_space<vmem>>, vector<16x32xbf16>
    tpu.vector_store %arg13[%c0_95, %c0_96], %140 {strides = array<i32>} : memref<32x32xbf16, #tpu.memory_space<vmem>>, vector<16x32xbf16>,
    %c0_97 = arith.constant 0 : index
    %c128_98 = arith.constant 128 : index
    %142 = vector.load %arg15[%c0_97, %c128_98] : memref<16x160xbf16, #tpu.memory_space<vmem>>, vector<16x32xbf16>
    %c16_99 = arith.constant 16 : index
    %c0_100 = arith.constant 0 : index
    %143 = vector.load %arg13[%c16_99, %c0_100] : memref<32x32xbf16, #tpu.memory_space<vmem>>, vector<16x32xbf16>
    tpu.vector_store %arg13[%c16_99, %c0_100], %142 {strides = array<i32>} : memref<32x32xbf16, #tpu.memory_space<vmem>>, vector<16x32xbf16>,
    %c0_101 = arith.constant 0 : index
    %c0_102 = arith.constant 0 : index
    %144 = vector.load %arg10[%c0_101, %c0_102] : memref<16x32xbf16, #tpu.memory_space<vmem>>, vector<16x32xbf16>
    %c0_103 = arith.constant 0 : index
    %c0_104 = arith.constant 0 : index
    %145 = vector.load %arg13[%c0_103, %c0_104] : memref<32x32xbf16, #tpu.memory_space<vmem>>, vector<32x32xbf16>
    %cst_105 = arith.constant dense<0.000000e+00> : vector<16x32xf32>
    %146 = tpu.matmul %144, %145, %cst_105 {dimension_numbers = #tpu.dot_dimension_numbers<[1], [0], [0], [1], [0, 0, 1, 1], [], []>} : vector<16x32xbf16>, vector<32x32xbf16>, vector<16x32xf32> -> vector<16x32xf32>
    %c0_106 = arith.constant 0 : index
    %c0_107 = arith.constant 0 : index
    %147 = vector.load %arg11[%c0_106, %c0_107] : memref<16x1xf32, #tpu.memory_space<vmem>>, vector<16x1xf32>
    %148 = vector.broadcast %147 : vector<16x1xf32> to vector<16x32xf32>
    %149 = arith.addf %146, %148 : vector<16x32xf32>
    %cst_108 = arith.constant 0.000000e+00 : f32
    %150 = vector.broadcast %cst_108 : f32 to vector<16x32xf32>
    %151 = arith.maximumf %149, %150 : vector<16x32xf32>
    %c0_109 = arith.constant 0 : index
    %c128_110 = arith.constant 128 : index
    %152 = vector.load %arg14[%c0_109, %c128_110] : memref<16x160xbf16, #tpu.memory_space<vmem>>, vector<16x32xbf16>
    %153 = arith.extf %152 : vector<16x32xbf16> to vector<16x32xf32>
    %154 = arith.addf %151, %153 : vector<16x32xf32>
    %cst_111 = arith.constant 0.000000e+00 : f32
    %155 = vector.broadcast %cst_111 : f32 to vector<16x32xf32>
    %156 = arith.maximumf %154, %155 : vector<16x32xf32>
    %157 = vector.extract_strided_slice %156 {offsets = [0, 0], sizes = [8, 32], strides = [1, 1]} : vector<16x32xf32> to vector<8x32xf32>
    %c0_112 = arith.constant 0 : index
    %c0_113 = arith.constant 0 : index
    %158 = vector.load %arg12[%c0_112, %c0_113] : memref<8x32xf32, #tpu.memory_space<vmem>>, vector<8x32xf32>
    tpu.vector_store %arg12[%c0_112, %c0_113], %157 {strides = array<i32>} : memref<8x32xf32, #tpu.memory_space<vmem>>, vector<8x32xf32>,
    return
  }
  func.func @transform_0(%arg0: i32) -> (i32, i32) {
    %c0_i32 = arith.constant 0 : i32
    %c0_i32_0 = arith.constant 0 : i32
    return %c0_i32, %arg0 : i32, i32
  }
  func.func @transform_1(%arg0: i32) -> (i32, i32) {
    %c0_i32 = arith.constant 0 : i32
    %c0_i32_0 = arith.constant 0 : i32
    %c0_i32_1 = arith.constant 0 : i32
    return %c0_i32, %c0_i32_0 : i32, i32
  }
  func.func @transform_2(%arg0: i32) -> (i32, i32) {
    %c0_i32 = arith.constant 0 : i32
    %c0_i32_0 = arith.constant 0 : i32
    %c0_i32_1 = arith.constant 0 : i32
    return %c0_i32, %c0_i32_0 : i32, i32
  }
  func.func @transform_3(%arg0: i32) -> (i32, i32) {
    %c0_i32 = arith.constant 0 : i32
    %c0_i32_0 = arith.constant 0 : i32
    %c0_i32_1 = arith.constant 0 : i32
    return %c0_i32, %c0_i32_0 : i32, i32
  }
  func.func @transform_4(%arg0: i32) -> (i32, i32) {
    %c0_i32 = arith.constant 0 : i32
    %c0_i32_0 = arith.constant 0 : i32
    %c0_i32_1 = arith.constant 0 : i32
    return %c0_i32, %c0_i32_0 : i32, i32
  }
  func.func @transform_5(%arg0: i32) -> (i32, i32) {
    %c0_i32 = arith.constant 0 : i32
    %c0_i32_0 = arith.constant 0 : i32
    %c0_i32_1 = arith.constant 0 : i32
    return %c0_i32, %c0_i32_0 : i32, i32
  }
  func.func @transform_6(%arg0: i32) -> (i32, i32) {
    %c0_i32 = arith.constant 0 : i32
    %c0_i32_0 = arith.constant 0 : i32
    %c0_i32_1 = arith.constant 0 : i32
    return %c0_i32, %c0_i32_0 : i32, i32
  }
  func.func @transform_7(%arg0: i32) -> (i32, i32) {
    %c0_i32 = arith.constant 0 : i32
    %c0_i32_0 = arith.constant 0 : i32
    %c0_i32_1 = arith.constant 0 : i32
    return %c0_i32, %c0_i32_0 : i32, i32
  }
  func.func @transform_8(%arg0: i32) -> (i32, i32) {
    %c0_i32 = arith.constant 0 : i32
    %c0_i32_0 = arith.constant 0 : i32
    %c0_i32_1 = arith.constant 0 : i32
    return %c0_i32, %c0_i32_0 : i32, i32
  }
  func.func @transform_9(%arg0: i32) -> (i32, i32) {
    %c0_i32 = arith.constant 0 : i32
    %c0_i32_0 = arith.constant 0 : i32
    %c0_i32_1 = arith.constant 0 : i32
    return %c0_i32, %c0_i32_0 : i32, i32
  }
  func.func @transform_10(%arg0: i32) -> (i32, i32) {
    %c0_i32 = arith.constant 0 : i32
    %c0_i32_0 = arith.constant 0 : i32
    %c0_i32_1 = arith.constant 0 : i32
    return %c0_i32, %c0_i32_0 : i32, i32
  }
  func.func @transform_11(%arg0: i32) -> (i32, i32) {
    %c0_i32 = arith.constant 0 : i32
    %c0_i32_0 = arith.constant 0 : i32
    return %c0_i32, %arg0 : i32, i32
  }
}

</mosaic_0001>

<bundles_post_ra>
// kernel: tpu_custom_call.1
= control target key start
LH: loop header
LB: loop body
LE: loop exit
PB: predicated region body
PF: predicated region fallthrough
CT: control target
= control target key end

     0   :  { %v54_v0 = vlaneseq  ;;  %vm52_vm0 = vcmask 261120   ;;  %v612_v2 = vmov 0   ;;  %s807_s0 = inlined_call_operand.vmem [shape: bf16[16,32], index: 0, kind: input, shape index: {}]   ;;  %s808_s1 = inlined_call_operand.vmem [shape: bf16[16,32], index: 1, kind: input, shape index: {}]   ;;  %s809_s2 = inlined_call_operand.vmem [shape: f32[16,1], index: 2, kind: input, shape index: {}]   ;;  %s810_s3 = inlined_call_operand.vmem [shape: bf16[16,32], index: 3, kind: input, shape index: {}]   ;;  %s811_s4 = inlined_call_operand.vmem [shape: f32[16,1], index: 4, kind: input, shape index: {}]   ;;  %s812_s5 = inlined_call_operand.vmem [shape: bf16[16,16], index: 5, kind: input, shape index: {}]   ;;  %s813_s6 = inlined_call_operand.vmem [shape: f32[16,1], index: 6, kind: input, shape index: {}]   ;;  %s814_s7 = inlined_call_operand.vmem [shape: bf16[16,32], index: 7, kind: input, shape index: {}]   ;;  %s815_s8 = inlined_call_operand.vmem [shape: f32[16,1], index: 8, kind: input, shape index: {}]   ;;  %s816_s9 = inlined_call_operand.vmem [shape: bf16[16,32], index: 9, kind: input, shape index: {}]   ;;  %s817_s10 = inlined_call_operand.vmem [shape: f32[16,1], index: 10, kind: input, shape index: {}]   ;;  %s818_s11 = inlined_call_operand.hbm [shape: f32[8,32], index: 11, kind: output, shape index: {}]  }
   0x1   :  { %v582_v1 = vld [vmem:[%s807_s0] sm:$0xff]   ;;  %580 = vset.pattern.permute.xlu1 %v612_v2  ;;  %581 = vset.pattern.permute.xlu0 %v612_v2 }
   0x2   :  { %v55_v3 = vand.u32 127, %v54_v0  ;;  %v74_v4 = vshrl.u32 %v54_v0, 7  ;;  %53 = vst.msk [vmem:[#allocation3 + $0x8] sm:$0xff] %vm52_vm0, %v582_v1 }
   0x4   :  { %v60_v5 = vand.u32 15, %v55_v3  ;;  %v75_v6 = vsub.s32 0, %v74_v4 }
   0x5   :  { %16 = vsyncpa [#allocation6], 0  ;;  %s613_s0 = smov 127   ;;  %v614_v10 = vmov 0.0   ;;  %s615_s19 = smov 1   ;;  %v98_v13 = vld [vmem:[%s809_s2] sm:$0xff] }
   0x6   :  { %vm70_vm1 = vcmp.lt.s32.totalorder %v60_v5, 1  ;;  %534 = vmatprep.subr.bf16.mxu0 %v614_v10  ;;  %542 = vmatprep.subr.bf16.mxu1 %v614_v10  ;;  %vm616_vm4 = vmmov 0   ;;  %v99_v14 = vld [vmem:[%s809_s2 + $0x8] sm:$0xff]  ;;  %vm318_vm5 = vcmp.lt.s32.totalorder %v60_v5, 2  ;;  %v182_v15 = vld [vmem:[%s811_s4] sm:$0xff]  ;;  %s617_s28 = smov 126  }
   0x7   :  { %vm71_vm2 = vmpackc.low %vm70_vm1, %vm70_vm1  ;;  %538 = vmatprep.mubr.msk.bf16.mxu0 %vm616_vm4, %v614_v10  ;;  %546 = vmatprep.mubr.msk.bf16.mxu1 %vm616_vm4, %v614_v10  ;;  %v248_v16 = vld [vmem:[%s813_s6] sm:$0xff]  ;;  %vm88_vm7 = vcmask 7168   ;;  %vm265_vm8 = vcmask 130048   ;;  %v183_v43 = vld [vmem:[%s811_s4 + $0x8] sm:$0xff]  ;;  %s618_s15 = smov 2   ;;  %vm336_vm10 = vcmask 15360  }
   0x8   :  { %v72_v7 = vsel %vm71_vm2, 65537, %v612_v2  ;;  %vm319_vm6 = vmpackc.low %vm318_vm5, %vm318_vm5  ;;  %v583_v24 = vld [vmem:[%s808_s1] sm:$0xff]   ;;  %v249_v47 = vld [vmem:[%s813_s6 + $0x8] sm:$0xff]  ;;  %s619_s21 = smov [#allocation5]  }
   0x9   :  { %v76_v8 = vrot.slane %v72_v7, %v75_v6  ;;  %v69_v9 = vld [vmem:[#allocation3 + $0x8] sm:$0xff]  ;;  %v320_v17 = vsel %vm319_vm6, 65537, %v612_v2  ;;  %v584_v25 = vld [vmem:[%s812_s5] sm:$0xff]   ;;  %s501_s22 = sshll.u32 %s619_s21, 4  ;;  %s502_s22 = int_to_ptr.vmem [resolvable:$true] %s501_s22 }
   0xa   :  { %93 = vst.msk [vmem:[#allocation2 + $0x8] sm:$0xff] %vm52_vm0, %v69_v9  ;;  %v324_v18 = vrot.slane %v320_v17, %v75_v6  ;;  %v346_v48 = vld [vmem:[%s815_s8] sm:$0xff]  ;;  %s588_s23 = scalar_lea.vmem %s502_s22, 128  ;;  %p593_p1 = scmp.lt.s32.totalorder %s502_s22, %s502_s22 }
   0xb   :  { %77 = vrot.lane.b32.xlu0 %v76_v8, %s613_s0  ;;  %v430_v49 = vld [vmem:[%s817_s10] sm:$0xff]  ;;  %p589_p0 = scmp.ne.s32.totalorder %s502_s22, %s588_s23  ;;  %p594_p2 = scmp.lt.s32.totalorder %s588_s23, %s588_s23 }
   0xc   :  { %v585_v55 = vld [vmem:[%s810_s3] sm:$0xff]  }
   0xd   :  { %p595_p3 = por %p594_p2, %p593_p1 }
   0xf   :  { %84 = vrot.lane.b32.xlu0 %v612_v2, %s615_s19  ;;  %p596_p4 = pnand %p595_p3, %p589_p0 }
  0x11   :  { %v97_v23 = vld [vmem:[#allocation2 + $0x8] sm:$0xff] }
  0x13   :  { %107 = vperm.xlu0 %581, %v99_v14  }
  0x17   :  { %186 = vperm.xlu0 %581, %v182_v15  }
  0x1b   :  { %252 = vperm.xlu0 %581, %v248_v16  }
  0x1f   :  { %325 = vrot.lane.b32.xlu0 %v324_v18, %s617_s28  ;;  %v586_v18 = vld [vmem:[%s814_s7] sm:$0xff]  }
  0x7d   :  { %v690_v11 = vpop.permute.xlu0 %77 }
  0x7e   :  { %vm79_vm3 = vcmp.ne.s16.totalorder %v690_v11, 0 }
  0x7f   :  { %v81_v12 = vsel %vm79_vm3, 0, %v69_v9 }
  0x80   :  { %86 = vrot.lane.b32.xlu1 %v81_v12, %s615_s19  ;;  %v347_v12 = vld [vmem:[%s815_s8 + $0x8] sm:$0xff] }
  0x81   :  { %v85_v20 = vpop.permute.xlu0 %84 }
  0x84   :  { %102 = vperm.xlu1 %580, %v98_v13  }
  0x88   :  { %169 = vrot.lane.b32.xlu1 %v612_v2, %s615_s19 }
  0x92   :  { %v108_v30 = vpop.permute.xlu0 %107 }
  0x96   :  { %v187_v39 = vpop.permute.xlu0 %186 }
  0x9a   :  { %v253_v41 = vpop.permute.xlu0 %252 }
  0x9e   :  { %v741_v44 = vpop.permute.xlu0 %325 }
  0x9f   :  { %vm327_vm9 = vcmp.ne.s16.totalorder %v741_v44, 0 }
  0xf2   :  { %v87_v19 = vpop.permute.xlu1 %86 }
  0xf3   :  { %v89_v21 = vsel %vm88_vm7, %v85_v20, %v87_v19 }
  0xf4   :  { %91 = vst.msk [vmem:[#allocation2] sm:$0xff] %vm52_vm0, %v89_v21 }
  0xfb   :  { %v96_v22 = vld [vmem:[#allocation2] sm:$0xff] }
  0xfc   :  { %535 = vmatpush3.bf16.msra.mxu0 %v96_v22 }
  0xfd   :  { %536 = vmatprep.subr.bf16.mxu0 %v614_v10 }
 0x100   :  { %537 = vmatpush3.bf16.msra.mxu0 %v97_v23 }
 0x101   :  { %550 = vmatprep.subr.bf16.mxu0 %v614_v10 }
 0x103   :  { %539 = vmatmul.mubr.msk.bf16.vlgmr.msra.gmra.mrb[0].mxu0 %vm52_vm0, %v583_v24  ;;  %v103_v26 = vpop.permute.xlu1 %102 }
 0x104   :  { %551 = vmatpush3.bf16.msra.mxu0 %v69_v9  ;;  %552 = vmatprep.mubr.msk.bf16.mxu0 %vm616_vm4, %v614_v10 }
 0x105   :  { %564 = vmatprep.subr.bf16.mxu0 %v614_v10 }
 0x107   :  { %v170_v50 = vpop.permute.xlu1 %169 }
 0x10b   :  { %553 = vmatmul.mubr.msk.bf16.vlgmr.msra.gmra.mrb[4].mxu0 %vm265_vm8, %v584_v25 }
 0x10c   :  { %568 = vmatprep.mubr.msk.bf16.mxu0 %vm616_vm4, %v614_v10 }
 0x1d6   :  { %v152_v27 = vpop.f32.mrb[0].mxu0 }
 0x1d7   :  { %v153_v28 = vadd.f32 %v152_v27, %v103_v26  ;;  %v540_v29 = vpop.f32.mrb[1].mxu0 }
 0x1d8   :  { %v155_v31 = vpop.f32.mrb[2].mxu0 }
 0x1d9   :  { %v156_v32 = vadd.f32 %v155_v31, %v108_v30  ;;  %v541_v33 = vpop.f32.mrb[3].mxu0  ;;  %v159_v34 = vmax.f32 %v153_v28, 0.0 }
 0x1db   :  { %v160_v35 = vmax.f32 %v156_v32, 0.0 }
 0x1dd   :  { %v161_v36 = vpack.c.bf16 %v160_v35, %v159_v34 }
 0x1de   :  { %v303_v37 = vpop.f32.mrb[4].mxu0 }
 0x1df   :  { %162 = vst.msk [vmem:[#allocation4 + $0x8] sm:$0xff] %vm52_vm0, %v161_v36  ;;  %v554_v38 = vpop.f32.mrb[5].mxu0  ;;  %v304_v62 = vadd.f32 %v303_v37, %v253_v41  ;;  %v587_v37 = vld [vmem:[%s816_s9] sm:$0xff]  }
 0x1e0   :  { %v306_v45 = vpop.f32.mrb[6].mxu0 }
 0x1e1   :  { %v555_v46 = vpop.f32.mrb[7].mxu0 }
 0x1e6   :  { %v176_v40 = vld [vmem:[#allocation4 + $0x8] sm:$0xff] }
 0x1e7   :  { %177 = vst.msk [vmem:[#allocation2 + $0x8] sm:$0xff] %vm52_vm0, %v176_v40  ;;  %v166_v42 = vsel %vm79_vm3, 0, %v176_v40 }
 0x1e8   :  { %171 = vrot.lane.b32.xlu1 %v166_v42, %s615_s19 }
 0x1ec   :  { %191 = vperm.xlu1 %580, %v183_v43  }
 0x1ee   :  { %v181_v54 = vld [vmem:[#allocation2 + $0x8] sm:$0xff] }
 0x1f0   :  { %257 = vperm.xlu1 %580, %v249_v47  }
 0x1f4   :  { %332 = vrot.lane.b32.xlu1 %v612_v2, %s618_s15 }
 0x1f8   :  { %350 = vperm.xlu1 %580, %v346_v48  }
 0x1fc   :  { %417 = vrot.lane.b32.xlu1 %v612_v2, %s618_s15 }
 0x200   :  { %434 = vperm.xlu1 %580, %v430_v49  }
 0x25a   :  { %v172_v51 = vpop.permute.xlu1 %171 }
 0x25b   :  { %v173_v52 = vsel %vm88_vm7, %v170_v50, %v172_v51 }
 0x25c   :  { %175 = vst.msk [vmem:[#allocation2] sm:$0xff] %vm52_vm0, %v173_v52 }
 0x263   :  { %v180_v53 = vld [vmem:[#allocation2] sm:$0xff] }
 0x264   :  { %543 = vmatpush3.bf16.msra.mxu1 %v180_v53 }
 0x265   :  { %544 = vmatprep.subr.bf16.mxu1 %v614_v10 }
 0x268   :  { %545 = vmatpush3.bf16.msra.mxu1 %v181_v54 }
 0x269   :  { %556 = vmatprep.subr.bf16.mxu1 %v614_v10 }
 0x26b   :  { %547 = vmatmul.mubr.msk.bf16.vlgmr.msra.gmra.mrb[0].mxu1 %vm52_vm0, %v585_v55  ;;  %v192_v56 = vpop.permute.xlu1 %191 }
 0x26c   :  { %560 = vmatprep.mubr.msk.bf16.mxu1 %vm616_vm4, %v614_v10 }
 0x26f   :  { %v258_v60 = vpop.permute.xlu1 %257 }
 0x270   :  { %v307_v2 = vadd.f32 %v306_v45, %v258_v60 }
 0x273   :  { %v333_v13 = vpop.permute.xlu1 %332 }
 0x277   :  { %v351_v19 = vpop.permute.xlu1 %350 }
 0x27b   :  { %v418_v32 = vpop.permute.xlu1 %417 }
 0x27f   :  { %v435_v38 = vpop.permute.xlu1 %434 }
 0x33e   :  { %v236_v57 = vpop.f32.mrb[0].mxu1 }
 0x33f   :  { %v237_v58 = vadd.f32 %v236_v57, %v187_v39  ;;  %v548_v59 = vpop.f32.mrb[1].mxu1 }
 0x340   :  { %v239_v61 = vpop.f32.mrb[2].mxu1 }
 0x341   :  { %v243_v63 = vmax.f32 %v237_v58, 0.0  ;;  %v240_v0 = vadd.f32 %v239_v61, %v192_v56  ;;  %v549_v1 = vpop.f32.mrb[3].mxu1 }
 0x343   :  { %v310_v3 = vadd.f32 %v304_v62, %v243_v63  ;;  %v244_v4 = vmax.f32 %v240_v0, 0.0 }
 0x345   :  { %v311_v5 = vadd.f32 %v307_v2, %v244_v4  ;;  %v312_v6 = vmax.f32 %v310_v3, 0.0 }
 0x347   :  { %v313_v7 = vmax.f32 %v311_v5, 0.0 }
 0x349   :  { %v314_v8 = vpack.c.bf16 %v313_v7, %v312_v6 }
 0x34b   :  { %315 = vst.msk [vmem:[#allocation3 + $0x8] sm:$0xff] %vm52_vm0, %v314_v8 }
 0x352   :  { %v317_v9 = vld [vmem:[#allocation3 + $0x8] sm:$0xff] }
 0x353   :  { %v329_v11 = vsel %vm327_vm9, 0, %v317_v9  ;;  %341 = vst.msk [vmem:[#allocation2 + $0x8] sm:$0xff] %vm52_vm0, %v317_v9  ;;  %v491_v44 = vunpack.c.l.bf16 %v317_v9 }
 0x354   :  { %334 = vrot.lane.b32.xlu0 %v329_v11, %s618_s15 }
 0x358   :  { %355 = vperm.xlu0 %581, %v347_v12  }
 0x35a   :  { %v345_v17 = vld [vmem:[#allocation2 + $0x8] sm:$0xff] }
 0x3c6   :  { %v335_v14 = vpop.permute.xlu0 %334 }
 0x3c7   :  { %v337_v15 = vsel %vm336_vm10, %v333_v13, %v335_v14 }
 0x3c8   :  { %339 = vst.msk [vmem:[#allocation2] sm:$0xff] %vm52_vm0, %v337_v15 }
 0x3cf   :  { %v344_v16 = vld [vmem:[#allocation2] sm:$0xff] }
 0x3d0   :  { %557 = vmatpush3.bf16.msra.mxu1 %v344_v16 }
 0x3d1   :  { %558 = vmatprep.subr.bf16.mxu1 %v614_v10 }
 0x3d4   :  { %559 = vmatpush3.bf16.msra.mxu1 %v345_v17 }
 0x3d7   :  { %561 = vmatmul.mubr.msk.bf16.vlgmr.msra.gmra.mrb[4].mxu1 %vm52_vm0, %v586_v18  ;;  %v356_v23 = vpop.permute.xlu0 %355 }
 0x4aa   :  { %v400_v20 = vpop.f32.mrb[4].mxu1 }
 0x4ab   :  { %v401_v21 = vadd.f32 %v400_v20, %v351_v19  ;;  %v562_v22 = vpop.f32.mrb[5].mxu1 }
 0x4ac   :  { %v403_v24 = vpop.f32.mrb[6].mxu1 }
 0x4ad   :  { %v404_v25 = vadd.f32 %v403_v24, %v356_v23  ;;  %v563_v26 = vpop.f32.mrb[7].mxu1  ;;  %v407_v27 = vmax.f32 %v401_v21, 0.0 }
 0x4af   :  { %v408_v28 = vmax.f32 %v404_v25, 0.0 }
 0x4b1   :  { %v409_v29 = vpack.c.bf16 %v408_v28, %v407_v27 }
 0x4b3   :  { %410 = vst.msk [vmem:[#allocation4 + $0x8] sm:$0xff] %vm52_vm0, %v409_v29 }
 0x4ba   :  { %v412_v30 = vld [vmem:[#allocation4 + $0x8] sm:$0xff] }
 0x4bb   :  { %v414_v31 = vsel %vm327_vm9, 0, %v412_v30  ;;  %425 = vst.msk [vmem:[#allocation2 + $0x8] sm:$0xff] %vm52_vm0, %v412_v30 }
 0x4bc   :  { %419 = vrot.lane.b32.xlu0 %v414_v31, %s618_s15 }
 0x4c2   :  { %v429_v36 = vld [vmem:[#allocation2 + $0x8] sm:$0xff] }
 0x52e   :  { %v420_v33 = vpop.permute.xlu0 %419 }
 0x52f   :  { %v421_v34 = vsel %vm336_vm10, %v418_v32, %v420_v33 }
 0x530   :  { %423 = vst.msk [vmem:[#allocation2] sm:$0xff] %vm52_vm0, %v421_v34 }
 0x537   :  { %v428_v35 = vld [vmem:[#allocation2] sm:$0xff] }
 0x538   :  { %565 = vmatpush3.bf16.msra.mxu0 %v428_v35 }
 0x539   :  { %566 = vmatprep.subr.bf16.mxu0 %v614_v10 }
 0x53c   :  { %567 = vmatpush3.bf16.msra.mxu0 %v429_v36 }
 0x53f   :  { %569 = vmatmul.mubr.msk.bf16.vlgmr.msra.gmra.mrb[8].mxu0 %vm52_vm0, %v587_v37 }
 0x612   :  { %v483_v39 = vpop.f32.mrb[8].mxu0 }
 0x613   :  { %v484_v40 = vadd.f32 %v483_v39, %v435_v38  ;;  %v570_v41 = vpop.f32.mrb[9].mxu0 }
 0x614   :  { %v486_v42 = vpop.f32.mrb[10].mxu0 }
 0x615   :  { %v489_v43 = vmax.f32 %v484_v40, 0.0  ;;  %v571_v45 = vpop.f32.mrb[11].mxu0 }
 0x617   :  { %v492_v46 = vadd.f32 %v491_v44, %v489_v43 }
 0x619   :  { %v493_v10 = vmax.f32 %v492_v46, 0.0 }
 0x61b   :  { %494 = vst.msk [vmem:[#allocation5] sm:$0xff] %vm52_vm0, %v493_v10 }
 0x61c   :  { %599 = shalt.err (!%p596_p4)
}
 0x61d   :  { %s600_s25 = scalar_lea.hbm %s818_s11, 128 }
 0x61e   :  { %p601_p5 = scmp.ne.s32.totalorder %s818_s11, %s600_s25  ;;  %p604_p6 = scmp.lt.u32.totalorder %s600_s25, %s818_s11 }
 0x620   :  { %p606_p7 = pnand %p604_p6, %p601_p5 }
 0x622   :  { %609 = shalt.err (!%p606_p7)
}
 0x623   :  { %504 = dma.vmem_to_hbm [thread:$0]  %s502_s22, 128, %s818_s11, [#allocation6]  }
 0x624   :  { %610 = dma.done.wait [#allocation6], 128  }
 0x625   :  { %611 = vsyncadd [#allocation6], 4294967168 }
 0x626   :  { %508 = vsyncpa [#allocation6], 1 }

</bundles_post_ra>
